<compile_context>
chip_gen: v6e
topology: v6e:2x2x1
jax: 0.10.0
libtpu: 0.0.40
codegen_flags: <defaults>
</compile_context>

<pallas_src>
import functools

import jax
import jax.numpy as jnp
from jax.experimental import pallas as pl
from jax.experimental.pallas import tpu as pltpu


IN_DIM = 512
HID_DIM = 256
OUT_DIM = 128
N_BRANCH = 2  # text, image


def _round_up(n, m):
    return ((n + m - 1) // m) * m


def _siamese_kernel(x_ref, w1_ref, b1_ref, w2_ref, b2_ref, o_ref):
    # x_ref : (TB, 512)   f32   VMEM (branch dim squeezed)
    # w1_ref: (512, 256)  bf16  VMEM
    # b1_ref: (1, 256)    f32   VMEM
    # w2_ref: (256, 128)  bf16  VMEM
    # b2_ref: (1, 128)    f32   VMEM
    # o_ref : (TB, 128)   f32   VMEM
    x = x_ref[...].astype(jnp.bfloat16)
    h = jnp.dot(x, w1_ref[...], preferred_element_type=jnp.float32)   # MXU, f32 acc
    h = jnp.maximum(h + b1_ref[...], 0.0)                             # f32 bias + ReLU (VPU)
    y = jnp.dot(h.astype(jnp.bfloat16), w2_ref[...],
                preferred_element_type=jnp.float32)                   # MXU, f32 acc
    o_ref[...] = (y + b2_ref[...]).astype(o_ref.dtype)


def siamese_fused(x_stacked, w1, b1, w2, b2, *, tile_b):
    """Fused two-branch MLP.

    x_stacked: (2, B, 512) f32   (branch 0 = text, branch 1 = image)
    w1: (2, 512, 256) bf16   b1: (2, 1, 256) f32
    w2: (2, 256, 128) bf16   b2: (2, 1, 128) f32
    returns (2, B, 128) f32.  B must be a multiple of tile_b.
    """
    _, B, _ = x_stacked.shape
    assert B % tile_b == 0, "batch must be a multiple of the batch tile"
    grid = (N_BRANCH, B // tile_b)

    flops = 2 * N_BRANCH * B * (IN_DIM * HID_DIM + HID_DIM * OUT_DIM)
    bytes_accessed = (
        4 * N_BRANCH * B * (IN_DIM + OUT_DIM)                          # x + out (f32)
        + 2 * N_BRANCH * (IN_DIM * HID_DIM + HID_DIM * OUT_DIM)        # weights (bf16)
        + 4 * N_BRANCH * (HID_DIM + OUT_DIM)                           # biases (f32)
    )

    return pl.pallas_call(
        _siamese_kernel,
        out_shape=jax.ShapeDtypeStruct((N_BRANCH, B, OUT_DIM), x_stacked.dtype),
        grid_spec=pltpu.PrefetchScalarGridSpec(
            num_scalar_prefetch=0,
            grid=grid,
            in_specs=[
                pl.BlockSpec((pl.Squeezed(), tile_b, IN_DIM),
                             lambda s, i: (s, i, 0)),
                pl.BlockSpec((pl.Squeezed(), IN_DIM, HID_DIM),
                             lambda s, i: (s, 0, 0)),
                pl.BlockSpec((pl.Squeezed(), 1, HID_DIM),
                             lambda s, i: (s, 0, 0)),
                pl.BlockSpec((pl.Squeezed(), HID_DIM, OUT_DIM),
                             lambda s, i: (s, 0, 0)),
                pl.BlockSpec((pl.Squeezed(), 1, OUT_DIM),
                             lambda s, i: (s, 0, 0)),
            ],
            out_specs=pl.BlockSpec((pl.Squeezed(), tile_b, OUT_DIM),
                                   lambda s, i: (s, i, 0)),
        ),
        compiler_params=pltpu.CompilerParams(
            dimension_semantics=("parallel", "parallel")),
        cost_estimate=pl.CostEstimate(
            flops=flops, transcendentals=0, bytes_accessed=bytes_accessed),
    )(x_stacked, w1, b1, w2, b2)


@functools.partial(jax.jit, static_argnames=("tile_b",))
def siamese_forward(text_feature, image_feature, text_params, image_params,
                    *, tile_b=256):
    """Matches Siamese.forward: returns (output1, output2)."""
    B = text_feature.shape[0]

    # Pick a sublane-aligned batch tile and pad the batch up to it.
    tb = min(tile_b, _round_up(B, 8))
    B_pad = _round_up(B, tb)
    if B_pad != B:
        pad = ((0, B_pad - B), (0, 0))
        text_feature = jnp.pad(text_feature, pad)
        image_feature = jnp.pad(image_feature, pad)

    x = jnp.stack([text_feature, image_feature], axis=0)                  # (2, Bp, 512)

    # Weights to bf16 once (MXU operand dtype); biases stay f32.
    w1 = jnp.stack([text_params[0], image_params[0]]).astype(jnp.bfloat16)  # (2, 512, 256)
    b1 = jnp.stack([text_params[1], image_params[1]])                        # (2, 1, 256)
    w2 = jnp.stack([text_params[2], image_params[2]]).astype(jnp.bfloat16)   # (2, 256, 128)
    b2 = jnp.stack([text_params[3], image_params[3]])                        # (2, 1, 128)

    out = siamese_fused(x, w1, b1, w2, b2, tile_b=tb)                     # (2, Bp, 128)
    return out[0, :B], out[1, :B]


def init_branch_params(key, scale=0.02):
    # Weights kept as (in, out): kernel does x @ W + b  (== x @ W_pt.T + b).
    k1, k2, k3, k4 = jax.random.split(key, 4)
    w1 = scale * jax.random.normal(k1, (IN_DIM, HID_DIM), jnp.float32)
    b1 = scale * jax.random.normal(k2, (1, HID_DIM), jnp.float32)
    w2 = scale * jax.random.normal(k3, (HID_DIM, OUT_DIM), jnp.float32)
    b2 = scale * jax.random.normal(k4, (1, OUT_DIM), jnp.float32)
    return w1, b1, w2, b2


def _reference_branch_bf16(x, w1, b1, w2, b2):
    # Same numerics as the kernel: bf16 MXU operands, f32 accumulation/bias.
    h = jnp.dot(x.astype(jnp.bfloat16), w1.astype(jnp.bfloat16),
                preferred_element_type=jnp.float32) + b1
    h = jnp.maximum(h, 0.0)
    y = jnp.dot(h.astype(jnp.bfloat16), w2.astype(jnp.bfloat16),
                preferred_element_type=jnp.float32) + b2
    return y


if __name__ == "__main__":
    key = jax.random.PRNGKey(0)
    k_text_p, k_img_p, k_text_x, k_img_x = jax.random.split(key, 4)

    # Two independent branches, as in Siamese.__init__.
    text_params = init_branch_params(k_text_p)
    image_params = init_branch_params(k_img_p)

    # Small batch consistent with the forward (feature dim 512).
    B = 8
    text_feature = jax.random.normal(k_text_x, (B, IN_DIM), jnp.float32)
    image_feature = jax.random.normal(k_img_x, (B, IN_DIM), jnp.float32)

    out1, out2 = siamese_forward(text_feature, image_feature,
                                 text_params, image_params)
    jax.block_until_ready((out1, out2))

    # Correctness check vs. a bf16-matched plain-JAX reference.
    ref1 = _reference_branch_bf16(text_feature, *text_params)
    ref2 = _reference_branch_bf16(image_feature, *image_params)
    assert out1.shape == (B, OUT_DIM) and out2.shape == (B, OUT_DIM)
    assert jnp.allclose(out1, ref1, atol=2e-3, rtol=2e-3)
    assert jnp.allclose(out2, ref2, atol=2e-3, rtol=2e-3)

    print("KERNEL_OK")
</pallas_src>

<mosaic_0001>
module attributes {stable_mosaic.version = 11 : i64} {
  func.func @_siamese_kernel(%arg0: i32, %arg1: i32, %arg2: memref<1x8x512xf32, #tpu.memory_space<vmem>>, %arg3: memref<1x512x256xbf16, #tpu.memory_space<vmem>>, %arg4: memref<1x1x256xf32, #tpu.memory_space<vmem>>, %arg5: memref<1x256x128xbf16, #tpu.memory_space<vmem>>, %arg6: memref<1x1x128xf32, #tpu.memory_space<vmem>>, %arg7: memref<1x8x128xf32, #tpu.memory_space<vmem>>) attributes {dimension_semantics = [#tpu.dimension_semantics<parallel>, #tpu.dimension_semantics<parallel>], iteration_bounds = array<i64: 2, 1>, scalar_prefetch = 0 : i64, scratch_operands = 0 : i64, tpu.core_type = #tpu.core_type<tc>, window_params = [{transform_indices = @transform_0, window_bounds = array<i64: 1, 8, 512>}, {transform_indices = @transform_1, window_bounds = array<i64: 1, 512, 256>}, {transform_indices = @transform_2, window_bounds = array<i64: 1, 1, 256>}, {transform_indices = @transform_3, window_bounds = array<i64: 1, 256, 128>}, {transform_indices = @transform_4, window_bounds = array<i64: 1, 1, 128>}, {transform_indices = @transform_5, window_bounds = array<i64: 1, 8, 128>}]} {
    %c0 = arith.constant 0 : index
    %c0_0 = arith.constant 0 : index
    %c0_1 = arith.constant 0 : index
    %0 = vector.load %arg2[%c0, %c0_0, %c0_1] : memref<1x8x512xf32, #tpu.memory_space<vmem>>, vector<1x8x512xf32>
    %1 = vector.shape_cast %0 : vector<1x8x512xf32> to vector<8x512xf32>
    %2 = arith.truncf %1 : vector<8x512xf32> to vector<8x512xbf16>
    %c0_2 = arith.constant 0 : index
    %c0_3 = arith.constant 0 : index
    %c0_4 = arith.constant 0 : index
    %3 = vector.load %arg3[%c0_2, %c0_3, %c0_4] : memref<1x512x256xbf16, #tpu.memory_space<vmem>>, vector<1x512x256xbf16>
    %4 = vector.shape_cast %3 : vector<1x512x256xbf16> to vector<512x256xbf16>
    %cst = arith.constant dense<0.000000e+00> : vector<8x256xf32>
    %5 = tpu.matmul %2, %4, %cst {dimension_numbers = #tpu.dot_dimension_numbers<[1], [0], [0], [1], [0, 0, 1, 1], [], []>} : vector<8x512xbf16>, vector<512x256xbf16>, vector<8x256xf32> -> vector<8x256xf32>
    %c0_5 = arith.constant 0 : index
    %c0_6 = arith.constant 0 : index
    %c0_7 = arith.constant 0 : index
    %6 = vector.load %arg4[%c0_5, %c0_6, %c0_7] : memref<1x1x256xf32, #tpu.memory_space<vmem>>, vector<1x1x256xf32>
    %7 = vector.shape_cast %6 : vector<1x1x256xf32> to vector<1x256xf32>
    %8 = vector.broadcast %7 : vector<1x256xf32> to vector<8x256xf32>
    %9 = arith.addf %5, %8 : vector<8x256xf32>
    %cst_8 = arith.constant 0.000000e+00 : f32
    %10 = vector.broadcast %cst_8 : f32 to vector<8x256xf32>
    %11 = arith.maximumf %9, %10 : vector<8x256xf32>
    %12 = arith.truncf %11 : vector<8x256xf32> to vector<8x256xbf16>
    %c0_9 = arith.constant 0 : index
    %c0_10 = arith.constant 0 : index
    %c0_11 = arith.constant 0 : index
    %13 = vector.load %arg5[%c0_9, %c0_10, %c0_11] : memref<1x256x128xbf16, #tpu.memory_space<vmem>>, vector<1x256x128xbf16>
    %14 = vector.shape_cast %13 : vector<1x256x128xbf16> to vector<256x128xbf16>
    %cst_12 = arith.constant dense<0.000000e+00> : vector<8x128xf32>
    %15 = tpu.matmul %12, %14, %cst_12 {dimension_numbers = #tpu.dot_dimension_numbers<[1], [0], [0], [1], [0, 0, 1, 1], [], []>} : vector<8x256xbf16>, vector<256x128xbf16>, vector<8x128xf32> -> vector<8x128xf32>
    %c0_13 = arith.constant 0 : index
    %c0_14 = arith.constant 0 : index
    %c0_15 = arith.constant 0 : index
    %16 = vector.load %arg6[%c0_13, %c0_14, %c0_15] : memref<1x1x128xf32, #tpu.memory_space<vmem>>, vector<1x1x128xf32>
    %17 = vector.shape_cast %16 : vector<1x1x128xf32> to vector<1x128xf32>
    %18 = vector.broadcast %17 : vector<1x128xf32> to vector<8x128xf32>
    %19 = arith.addf %15, %18 : vector<8x128xf32>
    %c0_16 = arith.constant 0 : index
    %c0_17 = arith.constant 0 : index
    %c0_18 = arith.constant 0 : index
    %20 = vector.load %arg7[%c0_16, %c0_17, %c0_18] : memref<1x8x128xf32, #tpu.memory_space<vmem>>, vector<1x8x128xf32>
    %21 = vector.shape_cast %20 : vector<1x8x128xf32> to vector<8x128xf32>
    %22 = vector.shape_cast %19 : vector<8x128xf32> to vector<1x8x128xf32>
    tpu.vector_store %arg7[%c0_16, %c0_17, %c0_18], %22 {strides = array<i32>} : memref<1x8x128xf32, #tpu.memory_space<vmem>>, vector<1x8x128xf32>,
    return
  }
  func.func @transform_0(%arg0: i32, %arg1: i32) -> (i32, i32, i32) {
    %c0_i32 = arith.constant 0 : i32
    %c0_i32_0 = arith.constant 0 : i32
    return %arg0, %arg1, %c0_i32 : i32, i32, i32
  }
  func.func @transform_1(%arg0: i32, %arg1: i32) -> (i32, i32, i32) {
    %c0_i32 = arith.constant 0 : i32
    %c0_i32_0 = arith.constant 0 : i32
    %c0_i32_1 = arith.constant 0 : i32
    return %arg0, %c0_i32, %c0_i32_0 : i32, i32, i32
  }
  func.func @transform_2(%arg0: i32, %arg1: i32) -> (i32, i32, i32) {
    %c0_i32 = arith.constant 0 : i32
    %c0_i32_0 = arith.constant 0 : i32
    %c0_i32_1 = arith.constant 0 : i32
    return %arg0, %c0_i32, %c0_i32_0 : i32, i32, i32
  }
  func.func @transform_3(%arg0: i32, %arg1: i32) -> (i32, i32, i32) {
    %c0_i32 = arith.constant 0 : i32
    %c0_i32_0 = arith.constant 0 : i32
    %c0_i32_1 = arith.constant 0 : i32
    return %arg0, %c0_i32, %c0_i32_0 : i32, i32, i32
  }
  func.func @transform_4(%arg0: i32, %arg1: i32) -> (i32, i32, i32) {
    %c0_i32 = arith.constant 0 : i32
    %c0_i32_0 = arith.constant 0 : i32
    %c0_i32_1 = arith.constant 0 : i32
    return %arg0, %c0_i32, %c0_i32_0 : i32, i32, i32
  }
  func.func @transform_5(%arg0: i32, %arg1: i32) -> (i32, i32, i32) {
    %c0_i32 = arith.constant 0 : i32
    %c0_i32_0 = arith.constant 0 : i32
    return %arg0, %arg1, %c0_i32 : i32, i32, i32
  }
}

</mosaic_0001>

<bundles_post_ra>
// kernel: siamese_forward.1
= control target key start
LH: loop header
LB: loop body
LE: loop exit
PB: predicated region body
PF: predicated region fallthrough
CT: control target
= control target key end

     0   :  { %s1431_s18 = smov 0   ;;  %s1433_s19 = smov 0   ;;  %s1574_s0 = inlined_call_operand.vmem [shape: f32[2,8,512], index: 0, kind: input, shape index: {}]   ;;  %s1575_s1 = inlined_call_operand.vmem [shape: bf16[2,512,256], index: 1, kind: input, shape index: {}]   ;;  %s1576_s2 = inlined_call_operand.vmem [shape: f32[2,1,256], index: 2, kind: input, shape index: {}]   ;;  %s1577_s3 = inlined_call_operand.vmem [shape: bf16[2,256,128], index: 3, kind: input, shape index: {}]   ;;  %s1578_s4 = inlined_call_operand.vmem [shape: f32[2,1,128], index: 4, kind: input, shape index: {}]   ;;  %s1579_s5 = inlined_call_operand.vmem [shape: f32[2,8,128], index: 5, kind: output, shape index: {}]  }
   0x1   :  { %s1435_s20 = smov 0  }
   0x2 LB: > { %s27_s21 = sadd.s32 1, %s1395_s19  ;;  %p1124_p0 = scmp.ge.s32.totalorder %s1399_s20, 1  ;;  %s1399_s20 = sphi %s1435_s20, %s15_s20   ;;  %s1395_s19 = sphi %s1433_s19, %s1581_s19   ;;  %s1391_s18 = sphi %s1431_s18, %s1580_s18  }
   0x3   : > { %p29_p1 = scmp.ge.s32.totalorder %s27_s21, 2  ;;  %p244_p2 = scmp.lt.s32.totalorder %s1399_s20, 3 }
   0x5   : > { %s1583_s21 = smov (%p29_p1, %s27_s21), 0  ;;  %p245_p3 = pnand %p1124_p0, %p244_p2 }
   0x6   : > { %p295_p4 = scmp.lt.s32.totalorder (!%p245_p3), %s1391_s18, 1 }
   0x7   : > { %248 = sbr.rel (%p245_p3) target bundleno = 484 (0x1e4), region = 40 }
   0xc   : > { %s1585_s18 = smov (!%p295_p4, %s1391_s18), 1 }
   0xd   : > { %s1217_s22 = sshll.u32 %s1585_s18, 9  ;;  %s1216_s26 = sshll.u32 %s1585_s18, 5 }
   0xe   : > { %s1455_s25 = scalar_lea.vmem %s1575_s1, %s1217_s22  ;;  %s1505_s29 = scalar_lea.vmem %s1574_s0, %s1216_s26 }
   0xf   : > { %v1265_v0 = vld [vmem:[%s1455_s25 + $0x74] ss:$8 sps:$4 sm:$0xff]   ;;  %v1269_v2 = vld [vmem:[%s1455_s25 + $0x70] ss:$8 sps:$4 sm:$0xff]   ;;  %v1271_v4 = vld [vmem:[%s1455_s25 + $0x64] ss:$8 sps:$4 sm:$0xff]   ;;  %s320_s15 = scalar_lea.vmem %s1578_s4, %s1585_s18 }
  0x10   : > { %v1267_v1 = vld [vmem:[%s1455_s25 + $0x174] ss:$8 sps:$4 sm:$0xff]   ;;  %733 = vmatprep.subr.bf16.mxu0 %v1265_v0  ;;  %v1270_v3 = vld [vmem:[%s1455_s25 + $0x170] ss:$8 sps:$4 sm:$0xff]   ;;  %v1273_v5 = vld [vmem:[%s1455_s25 + $0x164] ss:$8 sps:$4 sm:$0xff]  }
  0x11   : > { %774 = vmatprep.subr.bf16.mxu1 %v1267_v1  ;;  %734 = vmatpush1.bf16.msra.mxu0 %v1269_v2  ;;  %v1275_v6 = vld [vmem:[%s1455_s25 + $0x60] ss:$8 sps:$4 sm:$0xff]   ;;  %v1277_v8 = vld [vmem:[%s1455_s25 + $0x54] ss:$8 sps:$4 sm:$0xff]   ;;  %v1281_v10 = vld [vmem:[%s1455_s25 + $0x50] ss:$8 sps:$4 sm:$0xff]  }
  0x12   : > { %775 = vmatpush1.bf16.msra.mxu1 %v1270_v3  ;;  %735 = vmatprep.subr.bf16.mxu0 %v1271_v4  ;;  %v1276_v7 = vld [vmem:[%s1455_s25 + $0x160] ss:$8 sps:$4 sm:$0xff]   ;;  %v1279_v9 = vld [vmem:[%s1455_s25 + $0x154] ss:$8 sps:$4 sm:$0xff]   ;;  %v1282_v11 = vld [vmem:[%s1455_s25 + $0x150] ss:$8 sps:$4 sm:$0xff]  }
  0x13   : > { %776 = vmatprep.subr.bf16.mxu1 %v1273_v5  ;;  %v1283_v12 = vld [vmem:[%s1455_s25 + $0x44] ss:$8 sps:$4 sm:$0xff]   ;;  %v1287_v14 = vld [vmem:[%s1455_s25 + $0x40] ss:$8 sps:$4 sm:$0xff]   ;;  %v1289_v16 = vld [vmem:[%s1455_s25 + $0x34] ss:$8 sps:$4 sm:$0xff]  }
  0x14   : > { %v1285_v13 = vld [vmem:[%s1455_s25 + $0x144] ss:$8 sps:$4 sm:$0xff]   ;;  %v1288_v15 = vld [vmem:[%s1455_s25 + $0x140] ss:$8 sps:$4 sm:$0xff]   ;;  %v1291_v17 = vld [vmem:[%s1455_s25 + $0x134] ss:$8 sps:$4 sm:$0xff]  }
  0x15   : > { %736 = vmatpush1.bf16.msra.mxu0 %v1275_v6  ;;  %v1293_v18 = vld [vmem:[%s1455_s25 + $0x30] ss:$8 sps:$4 sm:$0xff]   ;;  %v1295_v20 = vld [vmem:[%s1455_s25 + $0x24] ss:$8 sps:$4 sm:$0xff]   ;;  %v1299_v22 = vld [vmem:[%s1455_s25 + $0x20] ss:$8 sps:$4 sm:$0xff]  }
  0x16   : > { %777 = vmatpush1.bf16.msra.mxu1 %v1276_v7  ;;  %737 = vmatprep.subr.bf16.mxu0 %v1277_v8  ;;  %v1294_v19 = vld [vmem:[%s1455_s25 + $0x130] ss:$8 sps:$4 sm:$0xff]   ;;  %v1297_v21 = vld [vmem:[%s1455_s25 + $0x124] ss:$8 sps:$4 sm:$0xff]   ;;  %v1300_v23 = vld [vmem:[%s1455_s25 + $0x120] ss:$8 sps:$4 sm:$0xff]  }
  0x17   : > { %778 = vmatprep.subr.bf16.mxu1 %v1279_v9  ;;  %v1301_v24 = vld [vmem:[%s1455_s25 + $0x14] ss:$8 sps:$4 sm:$0xff]   ;;  %v1305_v26 = vld [vmem:[%s1455_s25 + $0x10] ss:$8 sps:$4 sm:$0xff]   ;;  %v1307_v28 = vld [vmem:[%s1455_s25 + $0x4] ss:$8 sps:$4 sm:$0xff]  }
  0x18   : > { %v1303_v25 = vld [vmem:[%s1455_s25 + $0x114] ss:$8 sps:$4 sm:$0xff]   ;;  %v1306_v27 = vld [vmem:[%s1455_s25 + $0x110] ss:$8 sps:$4 sm:$0xff]   ;;  %v1309_v29 = vld [vmem:[%s1455_s25 + $0x104] ss:$8 sps:$4 sm:$0xff]  }
  0x19   : > { %738 = vmatpush1.bf16.msra.mxu0 %v1281_v10  ;;  %v1311_v30 = vld [vmem:[%s1455_s25] ss:$8 sps:$4 sm:$0xff]   ;;  %v1313_v32 = vld [vmem:[%s1455_s25 + $0xf4] ss:$8 sps:$4 sm:$0xff]   ;;  %v1317_v34 = vld [vmem:[%s1455_s25 + $0xf0] ss:$8 sps:$4 sm:$0xff]  }
  0x1a   : > { %779 = vmatpush1.bf16.msra.mxu1 %v1282_v11  ;;  %739 = vmatprep.subr.bf16.mxu0 %v1283_v12  ;;  %v1312_v31 = vld [vmem:[%s1455_s25 + $0x100] ss:$8 sps:$4 sm:$0xff]   ;;  %v1315_v33 = vld [vmem:[%s1455_s25 + $0x1f4] ss:$8 sps:$4 sm:$0xff]   ;;  %v1318_v35 = vld [vmem:[%s1455_s25 + $0x1f0] ss:$8 sps:$4 sm:$0xff]  }
  0x1b   : > { %780 = vmatprep.subr.bf16.mxu1 %v1285_v13  ;;  %v1319_v36 = vld [vmem:[%s1455_s25 + $0xe4] ss:$8 sps:$4 sm:$0xff]   ;;  %v1323_v38 = vld [vmem:[%s1455_s25 + $0xe0] ss:$8 sps:$4 sm:$0xff]   ;;  %v1325_v40 = vld [vmem:[%s1455_s25 + $0xd4] ss:$8 sps:$4 sm:$0xff]  }
  0x1c   : > { %v1321_v37 = vld [vmem:[%s1455_s25 + $0x1e4] ss:$8 sps:$4 sm:$0xff]   ;;  %v1324_v39 = vld [vmem:[%s1455_s25 + $0x1e0] ss:$8 sps:$4 sm:$0xff]   ;;  %v1327_v41 = vld [vmem:[%s1455_s25 + $0x1d4] ss:$8 sps:$4 sm:$0xff]  }
  0x1d   : > { %740 = vmatpush1.bf16.msra.mxu0 %v1287_v14  ;;  %v1329_v42 = vld [vmem:[%s1455_s25 + $0xd0] ss:$8 sps:$4 sm:$0xff]   ;;  %v1331_v44 = vld [vmem:[%s1455_s25 + $0xc4] ss:$8 sps:$4 sm:$0xff]   ;;  %s1218_s30 = sshll.u32 %s1585_s18, 7  ;;  %s1129_s9 = sshll.u32 %s1585_s18, 1 }
  0x1e   : > { %781 = vmatpush1.bf16.msra.mxu1 %v1288_v15  ;;  %741 = vmatprep.subr.bf16.mxu0 %v1289_v16  ;;  %v1330_v43 = vld [vmem:[%s1455_s25 + $0x1d0] ss:$8 sps:$4 sm:$0xff]   ;;  %v1333_v45 = vld [vmem:[%s1455_s25 + $0x1c4] ss:$8 sps:$4 sm:$0xff]   ;;  %v1335_v47 = vld [vmem:[%s1455_s25 + $0xc0] ss:$8 sps:$4 sm:$0xff]   ;;  %s1517_s8 = scalar_lea.vmem %s1577_s3, %s1218_s30  ;;  %s312_s12 = scalar_lea.vmem %s1576_s2, %s1129_s9 }
  0x1f   : > { %782 = vmatprep.subr.bf16.mxu1 %v1291_v17  ;;  %v330_v46 = vld [vmem:[%s1505_s29 + $0x8] sm:$0xff]  ;;  %v332_v50 = vld [vmem:[%s1505_s29 + $0x18] sm:$0xff]  ;;  %v329_v4 = vld [vmem:[%s1505_s29] sm:$0xff]  ;;  %s1132_s16 = sshll.u32 %s1585_s18, 3 }
  0x20   : > { %v1336_v48 = vld [vmem:[%s1455_s25 + $0x1c0] ss:$8 sps:$4 sm:$0xff]   ;;  %v334_v49 = vpack.c.bf16 %v330_v46, %v330_v46  ;;  %v1337_v51 = vld [vmem:[%s1455_s25 + $0xb4] ss:$8 sps:$4 sm:$0xff]   ;;  %v336_v52 = vpack.c.bf16 %v332_v50, %v332_v50  ;;  %v1341_v54 = vld [vmem:[%s1455_s25 + $0xb0] ss:$8 sps:$4 sm:$0xff]   ;;  %v333_v7 = vpack.c.bf16 %v329_v4, %v329_v4  ;;  %s327_s23 = scalar_lea.vmem %s1579_s5, %s1132_s16 }
  0x21   : > { %742 = vmatpush1.bf16.msra.mxu0 %v1293_v18  ;;  %v1339_v53 = vld [vmem:[%s1455_s25 + $0x1b4] ss:$8 sps:$4 sm:$0xff]   ;;  %v1342_v55 = vld [vmem:[%s1455_s25 + $0x1b0] ss:$8 sps:$4 sm:$0xff]   ;;  %v1343_v56 = vld [vmem:[%s1455_s25 + $0xa4] ss:$8 sps:$4 sm:$0xff]  }
  0x22   : > { %783 = vmatpush1.bf16.msra.mxu1 %v1294_v19  ;;  %743 = vmatprep.subr.bf16.mxu0 %v1295_v20  ;;  %v1345_v57 = vld [vmem:[%s1455_s25 + $0x1a4] ss:$8 sps:$4 sm:$0xff]   ;;  %v1347_v58 = vld [vmem:[%s1455_s25 + $0xa0] ss:$8 sps:$4 sm:$0xff]   ;;  %v1349_v60 = vld [vmem:[%s1455_s25 + $0x94] ss:$8 sps:$4 sm:$0xff]  }
  0x23   : > { %784 = vmatprep.subr.bf16.mxu1 %v1297_v21  ;;  %765 = vmatprep.mubr.bf16.mxu0 %v334_v49  ;;  %v1348_v59 = vld [vmem:[%s1455_s25 + $0x1a0] ss:$8 sps:$4 sm:$0xff]   ;;  %v1351_v61 = vld [vmem:[%s1455_s25 + $0x194] ss:$8 sps:$4 sm:$0xff]   ;;  %v1353_v62 = vld [vmem:[%s1455_s25 + $0x90] ss:$8 sps:$4 sm:$0xff]  }
  0x24   : > { %806 = vmatprep.mubr.bf16.mxu1 %v336_v52  ;;  %v1354_v63 = vld [vmem:[%s1455_s25 + $0x190] ss:$8 sps:$4 sm:$0xff]   ;;  %v1355_v0 = vld [vmem:[%s1455_s25 + $0x84] ss:$8 sps:$4 sm:$0xff]   ;;  %v1359_v2 = vld [vmem:[%s1455_s25 + $0x80] ss:$8 sps:$4 sm:$0xff]  }
  0x25   : > { %744 = vmatpush1.bf16.msra.mxu0 %v1299_v22  ;;  %v1357_v1 = vld [vmem:[%s1455_s25 + $0x184] ss:$8 sps:$4 sm:$0xff]   ;;  %v1360_v3 = vld [vmem:[%s1455_s25 + $0x180] ss:$8 sps:$4 sm:$0xff]   ;;  %v331_v5 = vld [vmem:[%s1505_s29 + $0x10] sm:$0xff] }
  0x26   : > { %785 = vmatpush1.bf16.msra.mxu1 %v1300_v23  ;;  %745 = vmatprep.subr.bf16.mxu0 %v1301_v24  ;;  %v1361_v6 = vld [vmem:[%s1517_s8 + $0x78] sm:$0xff]   ;;  %v335_v8 = vpack.c.bf16 %v331_v5, %v331_v5  ;;  %v1363_v10 = vld [vmem:[%s1517_s8 + $0x70] sm:$0xff]   ;;  %v1365_v12 = vld [vmem:[%s1517_s8 + $0x68] sm:$0xff]   ;;  %v403_v24 = vlaneseq }
  0x27   : > { %786 = vmatprep.subr.bf16.mxu1 %v1303_v25  ;;  %v1362_v9 = vld [vmem:[%s1517_s8 + $0x38] sm:$0xff]   ;;  %v1364_v11 = vld [vmem:[%s1517_s8 + $0x30] sm:$0xff]   ;;  %v1366_v13 = vld [vmem:[%s1517_s8 + $0x28] sm:$0xff]  }
  0x28   : > { %v1367_v14 = vld [vmem:[%s1517_s8 + $0x60] sm:$0xff]   ;;  %v1369_v16 = vld [vmem:[%s1517_s8 + $0x58] sm:$0xff]   ;;  %v1371_v18 = vld [vmem:[%s1517_s8 + $0x50] sm:$0xff]   ;;  %v404_v25 = vshrl.u32 %v403_v24, 7 }
  0x29   : > { %746 = vmatpush1.bf16.msra.mxu0 %v1305_v26  ;;  %v1368_v15 = vld [vmem:[%s1517_s8 + $0x20] sm:$0xff]   ;;  %v1370_v17 = vld [vmem:[%s1517_s8 + $0x18] sm:$0xff]   ;;  %v1372_v19 = vld [vmem:[%s1517_s8 + $0x10] sm:$0xff]  }
  0x2a   : > { %787 = vmatpush1.bf16.msra.mxu1 %v1306_v27  ;;  %747 = vmatprep.subr.bf16.mxu0 %v1307_v28  ;;  %v1373_v20 = vld [vmem:[%s1517_s8 + $0x48] sm:$0xff]   ;;  %v1375_v22 = vld [vmem:[%s1517_s8 + $0x40] sm:$0xff]   ;;  %v405_v26 = vsub.s32 0, %v404_v25  ;;  %v409_v28 = vsub.s32 1, %v404_v25 }
  0x2b   : > { %788 = vmatprep.subr.bf16.mxu1 %v1309_v29  ;;  %v1374_v21 = vld [vmem:[%s1517_s8 + $0x8] sm:$0xff]   ;;  %v1376_v23 = vld [vmem:[%s1517_s8] sm:$0xff]  }
  0x2c   : > { %v401_v27 = vld [vmem:[%s312_s12] sm:$0x3] }
  0x2d   : > { %748 = vmatpush1.bf16.msra.mxu0 %v1311_v30  ;;  %v406_v29 = vrot.slane %v401_v27, %v405_v26  ;;  %v410_v30 = vrot.slane %v401_v27, %v409_v28 }
  0x2e   : > { %789 = vmatpush1.bf16.msra.mxu1 %v1312_v31  ;;  %749 = vmatprep.subr.bf16.mxu0 %v1313_v32 }
  0x2f   : > { %790 = vmatprep.subr.bf16.mxu1 %v1315_v33 }
  0x31   : > { %750 = vmatpush2.bf16.msra.mxu0 %v1317_v34 }
  0x32   : > { %791 = vmatpush2.bf16.msra.mxu1 %v1318_v35  ;;  %751 = vmatprep.subr.bf16.mxu0 %v1319_v36 }
  0x33   : > { %792 = vmatprep.subr.bf16.mxu1 %v1321_v37 }
  0x35   : > { %752 = vmatpush2.bf16.msra.mxu0 %v1323_v38 }
  0x36   : > { %793 = vmatpush2.bf16.msra.mxu1 %v1324_v39  ;;  %753 = vmatprep.subr.bf16.mxu0 %v1325_v40 }
  0x37   : > { %794 = vmatprep.subr.bf16.mxu1 %v1327_v41 }
  0x39   : > { %754 = vmatpush2.bf16.msra.mxu0 %v1329_v42 }
  0x3a   : > { %795 = vmatpush2.bf16.msra.mxu1 %v1330_v43  ;;  %755 = vmatprep.subr.bf16.mxu0 %v1331_v44 }
  0x3b   : > { %796 = vmatprep.subr.bf16.mxu1 %v1333_v45 }
  0x3d   : > { %756 = vmatpush2.bf16.msra.mxu0 %v1335_v47 }
  0x3e   : > { %797 = vmatpush2.bf16.msra.mxu1 %v1336_v48  ;;  %757 = vmatprep.subr.bf16.mxu0 %v1337_v51  ;;  %v1197_v48 = vld [vmem:[%s320_s15] ss:$0 sm:$0xff] }
  0x3f   : > { %798 = vmatprep.subr.bf16.mxu1 %v1339_v53 }
  0x41   : > { %758 = vmatpush2.bf16.msra.mxu0 %v1341_v54 }
  0x42   : > { %799 = vmatpush2.bf16.msra.mxu1 %v1342_v55  ;;  %759 = vmatprep.subr.bf16.mxu0 %v1343_v56 }
  0x43   : > { %800 = vmatprep.subr.bf16.mxu1 %v1345_v57 }
  0x45   : > { %760 = vmatpush2.bf16.msra.mxu0 %v1347_v58 }
  0x46   : > { %801 = vmatpush2.bf16.msra.mxu1 %v1348_v59  ;;  %761 = vmatprep.subr.bf16.mxu0 %v1349_v60 }
  0x47   : > { %802 = vmatprep.subr.bf16.mxu1 %v1351_v61 }
  0x49   : > { %762 = vmatpush2.bf16.msra.mxu0 %v1353_v62 }
  0x4a   : > { %803 = vmatpush2.bf16.msra.mxu1 %v1354_v63  ;;  %763 = vmatprep.subr.bf16.mxu0 %v1355_v0 }
  0x4b   : > { %804 = vmatprep.subr.bf16.mxu1 %v1357_v1 }
  0x4d   : > { %764 = vmatpush2.bf16.msra.mxu0 %v1359_v2 }
  0x4e   : > { %805 = vmatpush2.bf16.msra.mxu1 %v1360_v3  ;;  %1219 = vmatprep.subr.bf16.mxu0 %v1361_v6 }
  0x50   : > { %766 = vmatmul.mubr.bf16.vlgmr.msra.gmra.mxu0 %v333_v7 }
  0x51   : > { %807 = vmatmul.mubr.bf16.vlgmr.msra.gmra.mxu1 %v335_v8  ;;  %1220 = vmatpush3.bf16.msra.mxu0 %v1362_v9 }
  0x52   : > { %1221 = vmatprep.subr.bf16.mxu0 %v1363_v10 }
  0x55   : > { %1222 = vmatpush3.bf16.msra.mxu0 %v1364_v11 }
  0x56   : > { %1223 = vmatprep.subr.bf16.mxu0 %v1365_v12 }
  0x59   : > { %1224 = vmatpush3.bf16.msra.mxu0 %v1366_v13 }
  0x5a   : > { %1225 = vmatprep.subr.bf16.mxu0 %v1367_v14 }
  0x5d   : > { %1226 = vmatpush3.bf16.msra.mxu0 %v1368_v15 }
  0x5e   : > { %1227 = vmatprep.subr.bf16.mxu0 %v1369_v16 }
  0x61   : > { %1228 = vmatpush3.bf16.msra.mxu0 %v1370_v17 }
  0x62   : > { %1229 = vmatprep.subr.bf16.mxu0 %v1371_v18 }
  0x65   : > { %1230 = vmatpush3.bf16.msra.mxu0 %v1372_v19 }
  0x66   : > { %1231 = vmatprep.subr.bf16.mxu0 %v1373_v20 }
  0x69   : > { %1232 = vmatpush3.bf16.msra.mxu0 %v1374_v21 }
  0x6a   : > { %1233 = vmatprep.subr.bf16.mxu0 %v1375_v22 }
  0x6d   : > { %1234 = vmatpush3.bf16.msra.mxu0 %v1376_v23 }
 0x110   : > { %v767_v31 = vpop.f32.mrf.mxu0 }
 0x111   : > { %v808_v32 = vpop.f32.mrf.mxu1  ;;  %v768_v33 = vadd.f32 %v767_v31, %v406_v29 }
 0x112   : > { %v769_v34 = vpop.f32.mrf.mxu0 }
 0x113   : > { %v810_v35 = vpop.f32.mrf.mxu1  ;;  %v809_v36 = vadd.f32 %v808_v32, %v768_v33  ;;  %v770_v37 = vadd.f32 %v769_v34, %v410_v30 }
 0x114   : > { %v771_v38 = vpop.f32.mrf.mxu0 }
 0x115   : > { %v812_v39 = vpop.f32.mrf.mxu1  ;;  %v811_v40 = vadd.f32 %v810_v35, %v770_v37  ;;  %v815_v41 = vmax.f32 %v809_v36, 0.0 }
 0x116   : > { %v772_v42 = vpop.f32.mrf.mxu0 }
 0x117   : > { %v813_v43 = vpop.f32.mrf.mxu1  ;;  %v816_v44 = vmax.f32 %v811_v40, 0.0  ;;  %v817_v46 = vpack.c.bf16 %v815_v41, %v815_v41 }
 0x119   : > { %v818_v45 = vpack.c.bf16 %v816_v44, %v816_v44 }
 0x11b   : > { %986 = vmatprep.mubr.bf16.mxu0 %v818_v45 }
 0x11c   : > { %987 = vmatmul.mubr.bf16.vlgmr.msra.gmra.mxu0 %v817_v46 }
 0x1dc   : > { %v1235_v47 = vpop.f32.mrf.mxu0 }
 0x1de   : > { %v1236_v49 = vpop.f32.mrf.mxu0 }
 0x1df   : > { %v1237_v50 = vadd.f32 %v1236_v49, %v1235_v47 }
 0x1e0   : > { %v1238_v51 = vpop.f32.mrf.mxu0 }
 0x1e1   : > { %v989_v52 = vadd.f32 %v1237_v50, %v1197_v48 }
 0x1e2   : > { %v1239_v53 = vpop.f32.mrf.mxu0 }
 0x1e3   : > { %994 = vst [vmem:[%s327_s23] sm:$0xff] %v989_v52 }
 0x1e4 PF: > { %s15_s20 = sadd.s32 1, %s1399_s20   ;;  %s1580_s18 = smov %s1395_s19 }
 0x1e5   : > { %p12_p5 = scmp.ge.s32.totalorder %s15_s20, 4   ;;  %s1581_s19 = smov %s1583_s21 }
 0x1e7   :  { %14 = sbr.rel (!%p12_p5) target bundleno = 2 (0x2), region = 82 }

</bundles_post_ra>
